<compile_context>
chip_gen: v7x
topology: tpu7x:2x2x1
jax: 0.10.0
libtpu: 0.0.40
codegen_flags: <defaults>
</compile_context>

<pallas_src>
import functools

import jax
import jax.numpy as jnp
from jax import lax
from jax.experimental import pallas as pl
from jax.experimental.pallas import tpu as pltpu


def _round_up(v, m):
    return -(-v // m) * m


def _int_pow(x, n):
    """x**n (n >= 1 static int) via a VPU multiply chain."""
    assert n >= 1
    result = None
    base = x
    while n:
        if n & 1:
            result = base if result is None else result * base
        n >>= 1
        if n:
            base = base * base
    return result


def _pow_static(x, p):
    """x**p for static p.  Integer / half-integer p avoid the EUP exp+log path."""
    pf = float(p)
    if pf == 1.0:
        return x
    if pf == int(pf) and 1.0 <= pf <= 32.0:
        return _int_pow(x, int(pf))
    if (pf * 2.0) == int(pf * 2.0) and 0.5 <= pf <= 32.0:
        n = int(pf)                          # positive half-integer: x^n * sqrt(x)
        s = jnp.sqrt(x)                      # x >= eps > 0
        return s if n == 0 else _int_pow(x, n) * s
    return jnp.power(x, pf)                  # arbitrary p fallback (per-element)


def _root_static(m, p):
    """m**(1/p) on the tiny finalize tile only."""
    pf = float(p)
    if pf == 1.0:
        return m
    if pf == 2.0:
        return jnp.sqrt(m)
    if pf == 4.0:
        return jnp.sqrt(jnp.sqrt(m))
    return jnp.power(m, 1.0 / pf)


def _gem_kernel(x_ref, o_ref, acc_ref, *, p, eps, hw_total, tile_hw,
                needs_mask, lane_acc):
    # x_ref block: (TB, C_tile, tile_hw); o_ref block: (TB, C_tile)
    # acc_ref: (TB, C_tile, 128) f32 if lane_acc else (TB, C_tile) f32
    k = pl.program_id(2)
    n_last = pl.num_programs(2) - 1

    @pl.when(k == 0)
    def _():
        acc_ref[...] = jnp.zeros_like(acc_ref)

    x = x_ref[...].astype(jnp.float32)
    xp = _pow_static(jnp.maximum(x, eps), p)     # clamp(min=eps) ** p

    def _accumulate(v):
        if lane_acc:
            # Pure-VPU tree of 128-lane slice adds; cross-lane reduce deferred
            # to the finalize step (one XLU reduce per output block).
            chunks = [v[:, :, j * 128:(j + 1) * 128]
                      for j in range(tile_hw // 128)]
            while len(chunks) > 1:
                nxt = [a + b for a, b in zip(chunks[0::2], chunks[1::2])]
                if len(chunks) % 2:
                    nxt.append(chunks[-1])
                chunks = nxt
            acc_ref[...] += chunks[0]
        else:
            acc_ref[...] += jnp.sum(v, axis=-1)

    if needs_mask:
        # Mask only the final (partial) HW tile; full tiles accumulate unmasked.
        @pl.when(k < n_last)
        def _():
            _accumulate(xp)

        @pl.when(k == n_last)
        def _():
            lane = lax.broadcasted_iota(jnp.int32, xp.shape, dimension=2)
            valid = (k * tile_hw + lane) < hw_total
            # Keep the select: padded OOB data (NaN/Inf after the power) must
            # be dropped, not multiplied by 0.
            _accumulate(jnp.where(valid, xp, 0.0))
    else:
        _accumulate(xp)

    @pl.when(k == n_last)
    def _():
        acc = acc_ref[...]
        if lane_acc:
            acc = jnp.sum(acc, axis=-1)          # single XLU lane-reduce
        m = acc * (1.0 / float(hw_total))        # raw sum -> true mean
        o_ref[...] = _root_static(m, p).astype(o_ref.dtype)


def _vmem_capacity():
    """(physical VMEM bytes, detection succeeded)."""
    try:
        info = pltpu.get_tpu_info()
        cap = int(getattr(info, "vmem_capacity_bytes", 0) or 0)
        if cap > 0:
            return cap, True
    except Exception:
        pass
    return 64 << 20, False                        # conservative default


def _choose_blocks(B, C, HW, itemsize, budget_bytes, *, want_two_parallel):
    """Jointly pick (TB, C_tile, tile_hw) under the padded-VMEM budget."""
    sub_mult = max(8, 32 // max(1, itemsize))     # f32: 8, bf16: 16, int8: 32

    # Batch tile: output block's sublane dim must be a multiple of 8 or full B.
    TB = 8 if B % 8 == 0 else B

    # Channel tile: full C if small/awkward, else 128-multiple dividing C
    # (prefer 256-512 channels per block).
    if C % 128 == 0 and C > 512:
        if C % 512 == 0:
            C_tile = 512
        elif C % 256 == 0:
            C_tile = 256
        else:
            C_tile = 128
    else:
        C_tile = C

    # v7x megacore: guarantee >= 2 blocks on a parallel axis when possible.
    if want_two_parallel and (B // TB) * (C // C_tile) < 2:
        if C_tile == C and C % 256 == 0:
            C_tile = C // 2
        elif C_tile % 256 == 0:
            C_tile //= 2

    def padded_bytes(tb, ct, thw):
        # Real VMEM footprint: sublane-pad C_tile, lane-pad tile_hw to 128.
        return tb * _round_up(ct, sub_mult) * _round_up(thw, 128) * itemsize

    if padded_bytes(TB, C_tile, HW) <= budget_bytes:
        tile_hw = HW                              # full extent (always legal)
    else:
        def max_hw_lanes(tb, ct):
            per_lane = tb * _round_up(ct, sub_mult) * itemsize
            return max(128, (budget_bytes // per_lane) // 128 * 128)

        # Prefer long contiguous HW runs (>= 512 lanes) over wide channel tiles.
        while max_hw_lanes(TB, C_tile) < 512 and C_tile % 256 == 0 and C_tile > 128:
            C_tile //= 2
        tile_hw = min(max_hw_lanes(TB, C_tile), _round_up(HW, 128))
        if tile_hw >= HW:
            tile_hw = HW

    needs_mask = (HW % tile_hw) != 0
    lane_acc = (tile_hw % 128 == 0) and tile_hw >= 128
    return TB, C_tile, tile_hw, needs_mask, lane_acc


def generalized_mean_pooling(x, *, p=3.0, eps=1e-6):
    """x: (B, C, H, W) NCHW.  Returns (B, C, 1, 1), matching output_size=1."""
    # TODO(synk): output_size != 1 (general adaptive pooling grid) not implemented.
    assert float(p) > 0.0, "norm must be greater than 0"
    B, C, H, W = x.shape
    HW = H * W
    x_flat = x.reshape(B, C, HW)                  # native dtype through the DMA
    itemsize = jnp.dtype(x.dtype).itemsize

    cap, cap_known = _vmem_capacity()
    is_v7x_like = cap_known and cap <= (96 << 20)   # 64 MiB VMEM => v7x
    budget = (10 << 20) if is_v7x_like else (8 << 20)

    TB, C_tile, tile_hw, needs_mask, lane_acc = _choose_blocks(
        B, C, HW, itemsize, budget, want_two_parallel=is_v7x_like)

    n_hw = pl.cdiv(HW, tile_hw)
    use_triple_buffer = (tile_hw < 512) and (n_hw > 1)   # many short strided rows

    # Explicit vmem_limit_bytes from the actual padded footprint so the default
    # scoped limits (16 MiB on v5e) never constrain the pipeline.
    sub_mult = max(8, 32 // max(1, itemsize))
    in_block = TB * _round_up(C_tile, sub_mult) * _round_up(tile_hw, 128) * itemsize
    out_block = _round_up(TB, 8) * _round_up(C_tile, 128) * itemsize
    if lane_acc:
        acc_bytes = TB * _round_up(C_tile, 8) * 128 * 4
    else:
        acc_bytes = _round_up(TB, 8) * _round_up(C_tile, 128) * 4
    in_bufs = 3 if use_triple_buffer else 2
    need = in_bufs * in_block + 2 * out_block + acc_bytes + (6 << 20)
    vmem_limit = int(min(max(need, 32 << 20), cap - (2 << 20)))

    kernel = functools.partial(
        _gem_kernel, p=float(p), eps=float(eps), hw_total=HW,
        tile_hw=tile_hw, needs_mask=needs_mask, lane_acc=lane_acc)

    in_spec_kwargs = {}
    if use_triple_buffer:
        in_spec_kwargs["pipeline_mode"] = pl.Buffered(3)
    in_spec = pl.BlockSpec((TB, C_tile, tile_hw),
                           lambda b, c, k: (b, c, k), **in_spec_kwargs)

    acc_scratch = (pltpu.VMEM((TB, C_tile, 128), jnp.float32) if lane_acc
                   else pltpu.VMEM((TB, C_tile), jnp.float32))

    cost = pl.CostEstimate(
        flops=int(5 * B * C * HW),                # clamp + power chain + adds
        transcendentals=int(B * C),               # one root per output element
        bytes_accessed=int(B * C * HW * itemsize + B * C * itemsize))

    out = pl.pallas_call(
        kernel,
        out_shape=jax.ShapeDtypeStruct((B, C), x.dtype),
        grid_spec=pltpu.PrefetchScalarGridSpec(
            num_scalar_prefetch=0,
            grid=(B // TB, C // C_tile, n_hw),     # reduction (HW) axis last
            in_specs=[in_spec],
            out_specs=pl.BlockSpec((TB, C_tile), lambda b, c, k: (b, c)),
            scratch_shapes=[acc_scratch],
        ),
        compiler_params=pltpu.CompilerParams(
            dimension_semantics=("parallel", "parallel", "arbitrary"),
            vmem_limit_bytes=vmem_limit,
        ),
        cost_estimate=cost,
    )(x_flat)

    return out.reshape(B, C, 1, 1)


def _reference(x, p=3.0, eps=1e-6):
    xc = jnp.maximum(x.astype(jnp.float32), eps) ** p
    return jnp.mean(xc, axis=(2, 3), keepdims=True) ** (1.0 / p)


if __name__ == "__main__":
    key = jax.random.PRNGKey(0)
    # small shapes consistent with an NCHW feature map
    B, C, H, W = 2, 4, 16, 16
    x = jax.random.normal(key, (B, C, H, W), dtype=jnp.float32)

    y = generalized_mean_pooling(x, p=3.0, eps=1e-6)
    y = jax.block_until_ready(y)

    y_ref = _reference(x, p=3.0, eps=1e-6)
    assert y.shape == (B, C, 1, 1), y.shape
    assert jnp.allclose(y, y_ref, rtol=1e-5, atol=1e-5), "mismatch vs reference"

    print("KERNEL_OK")
</pallas_src>

<mosaic_0001>
module attributes {stable_mosaic.version = 11 : i64} {
  func.func @_gem_kernel(%arg0: i32, %arg1: i32, %arg2: i32, %arg3: memref<2x4x256xf32, #tpu.memory_space<vmem>>, %arg4: memref<2x4xf32, #tpu.memory_space<vmem>>, %arg5: memref<2x4x128xf32, #tpu.memory_space<vmem>>) attributes {dimension_semantics = [#tpu.dimension_semantics<parallel>, #tpu.dimension_semantics<parallel>, #tpu.dimension_semantics<arbitrary>], iteration_bounds = array<i64: 1, 1, 1>, scalar_prefetch = 0 : i64, scratch_operands = 1 : i64, tpu.core_type = #tpu.core_type<tc>, window_params = [{transform_indices = @transform_0, window_bounds = array<i64: 2, 4, 256>}, {transform_indices = @transform_1, window_bounds = array<i64: 2, 4>}]} {
    %c0_i32 = arith.constant 0 : i32
    %0 = arith.cmpi eq, %arg2, %c0_i32 : i32
    %1 = arith.extui %0 : i1 to i32
    %c0_i32_0 = arith.constant 0 : i32
    %2 = arith.cmpi ne, %1, %c0_i32_0 : i32
    scf.if %2 {
      %cst_11 = arith.constant 0.000000e+00 : f32
      %17 = vector.broadcast %cst_11 : f32 to vector<2x4x128xf32>
      %c0_12 = arith.constant 0 : index
      %c0_13 = arith.constant 0 : index
      %c0_14 = arith.constant 0 : index
      %18 = vector.load %arg5[%c0_12, %c0_13, %c0_14] : memref<2x4x128xf32, #tpu.memory_space<vmem>>, vector<2x4x128xf32>
      tpu.vector_store %arg5[%c0_12, %c0_13, %c0_14], %17 {strides = array<i32>} : memref<2x4x128xf32, #tpu.memory_space<vmem>>, vector<2x4x128xf32>,
    } else {
    }
    %c0 = arith.constant 0 : index
    %c0_1 = arith.constant 0 : index
    %c0_2 = arith.constant 0 : index
    %3 = vector.load %arg3[%c0, %c0_1, %c0_2] : memref<2x4x256xf32, #tpu.memory_space<vmem>>, vector<2x4x256xf32>
    %cst = arith.constant 9.99999997E-7 : f32
    %4 = vector.broadcast %cst : f32 to vector<2x4x256xf32>
    %5 = arith.maximumf %3, %4 : vector<2x4x256xf32>
    %6 = arith.mulf %5, %5 : vector<2x4x256xf32>
    %7 = arith.mulf %5, %6 : vector<2x4x256xf32>
    %8 = vector.extract_strided_slice %7 {offsets = [0, 0, 0], sizes = [2, 4, 128], strides = [1, 1, 1]} : vector<2x4x256xf32> to vector<2x4x128xf32>
    %9 = vector.extract_strided_slice %7 {offsets = [0, 0, 128], sizes = [2, 4, 128], strides = [1, 1, 1]} : vector<2x4x256xf32> to vector<2x4x128xf32>
    %10 = arith.addf %8, %9 : vector<2x4x128xf32>
    %c0_3 = arith.constant 0 : index
    %c0_4 = arith.constant 0 : index
    %c0_5 = arith.constant 0 : index
    %11 = vector.load %arg5[%c0_3, %c0_4, %c0_5] : memref<2x4x128xf32, #tpu.memory_space<vmem>>, vector<2x4x128xf32>
    %12 = arith.addf %11, %10 : vector<2x4x128xf32>
    %c0_6 = arith.constant 0 : index
    %c0_7 = arith.constant 0 : index
    %c0_8 = arith.constant 0 : index
    %13 = vector.load %arg5[%c0_6, %c0_7, %c0_8] : memref<2x4x128xf32, #tpu.memory_space<vmem>>, vector<2x4x128xf32>
    tpu.vector_store %arg5[%c0_6, %c0_7, %c0_8], %12 {strides = array<i32>} : memref<2x4x128xf32, #tpu.memory_space<vmem>>, vector<2x4x128xf32>,
    %c0_i32_9 = arith.constant 0 : i32
    %14 = arith.cmpi eq, %arg2, %c0_i32_9 : i32
    %15 = arith.extui %14 : i1 to i32
    %c0_i32_10 = arith.constant 0 : i32
    %16 = arith.cmpi ne, %15, %c0_i32_10 : i32
    scf.if %16 {
      %c0_11 = arith.constant 0 : index
      %c0_12 = arith.constant 0 : index
      %c0_13 = arith.constant 0 : index
      %17 = vector.load %arg5[%c0_11, %c0_12, %c0_13] : memref<2x4x128xf32, #tpu.memory_space<vmem>>, vector<2x4x128xf32>
      %cst_14 = arith.constant dense<0.000000e+00> : vector<2x4xf32>
      %18 = vector.multi_reduction <add>, %17, %cst_14 [2] : vector<2x4x128xf32> to vector<2x4xf32>
      %cst_15 = arith.constant 3.906250e-03 : f32
      %19 = vector.broadcast %cst_15 : f32 to vector<2x4xf32>
      %20 = arith.mulf %18, %19 : vector<2x4xf32>
      %cst_16 = arith.constant 0.333333343 : f32
      %21 = vector.broadcast %cst_16 : f32 to vector<2x4xf32>
      %22 = math.powf %20, %21 : vector<2x4xf32>
      %c0_17 = arith.constant 0 : index
      %c0_18 = arith.constant 0 : index
      %23 = vector.load %arg4[%c0_17, %c0_18] : memref<2x4xf32, #tpu.memory_space<vmem>>, vector<2x4xf32>
      tpu.vector_store %arg4[%c0_17, %c0_18], %22 {strides = array<i32>} : memref<2x4xf32, #tpu.memory_space<vmem>>, vector<2x4xf32>,
    } else {
    }
    return
  }
  func.func @transform_0(%arg0: i32, %arg1: i32, %arg2: i32) -> (i32, i32, i32) {
    %c0_i32 = arith.constant 0 : i32
    return %arg0, %arg1, %arg2 : i32, i32, i32
  }
  func.func @transform_1(%arg0: i32, %arg1: i32, %arg2: i32) -> (i32, i32) {
    %c0_i32 = arith.constant 0 : i32
    return %arg0, %arg1 : i32, i32
  }
}

</mosaic_0001>

<bundles_post_ra>
// kernel: tpu_custom_call.1
= control target key start
LH: loop header
LB: loop body
LE: loop exit
PB: predicated region body
PF: predicated region fallthrough
CT: control target
= control target key end

     0   :  { %6 = vsyncpa [#allocation4], 0  ;;  %s235_s0 = inlined_call_operand.hbm [shape: f32[2,4,256], index: 0, kind: input, shape index: {}]   ;;  %s236_s1 = inlined_call_operand.hbm [shape: f32[2,4], index: 1, kind: output, shape index: {}]  }
   0x1   :  { %7 = vsyncpa [#allocation5], 0  ;;  %s196_s6 = smov [#allocation3]   ;;  %s148_s10 = scalar_lea.hbm %s235_s0, 256 }
   0x2   :  { %s13_s7 = sshll.u32 %s196_s6, 4  ;;  %p149_p0 = scmp.ne.s32.totalorder %s235_s0, %s148_s10  ;;  %s14_s7 = int_to_ptr.vmem [resolvable:$true] %s13_s7 }
   0x3   :  { %p152_p1 = scmp.lt.u32.totalorder %s148_s10, %s235_s0 }
   0x5   :  { %p154_p2 = pnand %p152_p1, %p149_p0 }
   0x7   :  { %157 = shalt.err (!%p154_p2)
}
   0x8   :  { %s158_s15 = scalar_lea.vmem %s14_s7, 256  ;;  %p163_p4 = scmp.lt.s32.totalorder %s14_s7, %s14_s7 }
   0x9   :  { %p159_p3 = scmp.ne.s32.totalorder %s14_s7, %s158_s15  ;;  %p164_p5 = scmp.lt.s32.totalorder %s158_s15, %s158_s15 }
   0xb   :  { %p165_p6 = por %p164_p5, %p163_p4 }
   0xd   :  { %p166_p7 = pnand %p165_p6, %p159_p3 }
   0xf   :  { %169 = shalt.err (!%p166_p7)
}
  0x10   :  { %s197_s16 = smov 128   ;;  %s198_s17 = smov 8  }
  0x11   :  { %19 = dma.hbm_to_vmem [thread:$0]  %s235_s0, 256, %s14_s7, [#allocation4], %s197_s16, %s197_s16, %s198_s17  }
  0x12   :  { %192 = dma.done.wait [#allocation4], 256  }
  0x13   :  { %193 = vsyncadd [#allocation4], 4294967040  ;;  %v199_v0 = vmov 0.0   ;;  %v29_v1 = vld [vmem:[#allocation3] sm:$0xff]  ;;  %v30_v2 = vld [vmem:[#allocation3 + $0x8] sm:$0xff]  ;;  %vm56_vm0 = vcmask 1043456   ;;  %v69_v33 = vlaneseq }
  0x14   :  { %27 = vst [vmem:[#allocation2] sm:$0xf] %v199_v0  ;;  %28 = vst [vmem:[#allocation2 + $0x4] sm:$0xf] %v199_v0  ;;  %v31_v3 = vmax.f32 %v29_v1, 1e-06 }
  0x15   :  { %v32_v4 = vmax.f32 %v30_v2, 1e-06  ;;  %v70_v39 = vand.u32 127, %v69_v33  ;;  %v72_v40 = vshrl.u32 %v69_v33, 7  ;;  %s200_s0 = smov [#allocation6]   ;;  %vm79_vm11 = vcmask 1041409  }
  0x16   :  { %v33_v5 = vmul.f32 %v31_v3, %v31_v3  ;;  %s90_s20 = sshll.u32 %s200_s0, 4  ;;  %vm82_vm12 = vcmask 25600   ;;  %s91_s20 = int_to_ptr.vmem [resolvable:$true] %s90_s20 }
  0x17   :  { %v34_v6 = vmul.f32 %v32_v4, %v32_v4  ;;  %v73_v46 = vsub.s32 %v70_v39, %v72_v40  ;;  %s170_s21 = scalar_lea.vmem %s91_s20, 32  ;;  %p175_p9 = scmp.lt.s32.totalorder %s91_s20, %s91_s20 }
  0x18   :  { %v35_v7 = vmul.f32 %v33_v5, %v31_v3  ;;  %p171_p8 = scmp.ne.s32.totalorder %s91_s20, %s170_s21  ;;  %p176_p10 = scmp.lt.s32.totalorder %s170_s21, %s170_s21 }
  0x19   :  { %v36_v8 = vmul.f32 %v34_v6, %v32_v4 }
  0x1a   :  { %v39_v9 = vrot.slane %v35_v7, 4  ;;  %p177_p11 = por %p176_p10, %p175_p9 }
  0x1b   :  { %v40_v10 = vrot.slane %v36_v8, 4  ;;  %v45_v11 = vld [vmem:[#allocation2] sm:$0xf]  ;;  %v46_v12 = vld [vmem:[#allocation2 + $0x4] sm:$0xf] }
  0x1c   :  { %v43_v13 = vadd.f32 %v39_v9, %v35_v7  ;;  %p178_p12 = pnand %p177_p11, %p171_p8 }
  0x1d   :  { %v44_v14 = vadd.f32 %v40_v10, %v36_v8 }
  0x1e   :  { %v47_v15 = vadd.f32 %v45_v11, %v43_v13 }
  0x1f   :  { %v48_v16 = vadd.f32 %v46_v12, %v44_v14 }
  0x20   :  { %49 = vst [vmem:[#allocation2] sm:$0xf] %v47_v15 }
  0x21   :  { %50 = vst [vmem:[#allocation2 + $0x4] sm:$0xf] %v48_v16 }
  0x27   :  { %v54_v17 = vld [vmem:[#allocation2] sm:$0xf] }
  0x28   :  { %v55_v18 = vld [vmem:[#allocation2 + $0x4] sm:$0xf]  ;;  %v57_v19 = vsel %vm56_vm0, %v54_v17, 0.0 }
  0x29   :  { %58 = vadd.xlane.f32.xlu0 %v57_v19  ;;  %v60_v20 = vsel %vm56_vm0, %v55_v18, 0.0 }
  0x2d   :  { %61 = vadd.xlane.f32.xlu0 %v60_v20 }
  0xb6   :  { %v59_v21 = vpop.xlane.xlu0 %58 }
  0xb7   :  { %v63_v22 = vmul.f32 0.00390625, %v59_v21 }
  0xb9   :  { %v101_v23 = vand.u32 2147483647, %v63_v22  ;;  %v105_v31 = vand.u32 2147483648, %v63_v22  ;;  %vm100_vm3 = vcmp.lt.f32.partialorder %v63_v22, 0.0  ;;  %vm99_vm4 = vcmp.eq.f32.partialorder %v63_v22, 0.0 }
  0xba   :  { %v62_v24 = vpop.xlane.xlu0 %61 }
  0xbb   :  { %140 = vlog2.f32 %v101_v23  ;;  %v64_v25 = vmul.f32 0.00390625, %v62_v24  ;;  %vm109_vm1 = vweird.f32 %v101_v23  ;;  %vm111_vm2 = vcmp.eq.f32.partialorder %v101_v23, 0.0 }
  0xbc   :  { %vm102_vm8 = vcmp.eq.f32.partialorder %v101_v23, inf }
  0xbd   :  { %v119_v26 = vand.u32 2147483647, %v64_v25  ;;  %v123_v36 = vand.u32 2147483648, %v64_v25  ;;  %vm118_vm7 = vcmp.lt.f32.partialorder %v64_v25, 0.0  ;;  %vm117_vm9 = vcmp.eq.f32.partialorder %v64_v25, 0.0 }
  0xbf   :  { %142 = vlog2.f32 %v119_v26  ;;  %vm127_vm5 = vweird.f32 %v119_v26  ;;  %vm129_vm6 = vcmp.eq.f32.partialorder %v119_v26, 0.0  ;;  %vm120_vm10 = vcmp.eq.f32.partialorder %v119_v26, inf }
  0xc5   :  { %v141_v27 = vpop.eup %140 }
  0xc6   :  { %v106_v28 = vmul.f32 0.33333334, %v141_v27 }
  0xc8   :  { %144 = vpow2.f32 %v106_v28 }
  0xc9   :  { %v143_v29 = vpop.eup %142 }
  0xca   :  { %v124_v30 = vmul.f32 0.33333334, %v143_v29 }
  0xcc   :  { %146 = vpow2.f32 %v124_v30 }
  0xd2   :  { %v145_v32 = vpop.eup %144 }
  0xd3   :  { %v108_v34 = vor.u32 %v145_v32, %v105_v31 }
  0xd5   :  { %v110_v35 = vsel %vm109_vm1, %v63_v22, %v108_v34 }
  0xd6   :  { %v147_v37 = vpop.eup %146  ;;  %v113_v38 = vsel %vm111_vm2, %v105_v31, %v110_v35 }
  0xd7   :  { %v126_v41 = vor.u32 %v147_v37, %v123_v36  ;;  %v114_v42 = vsel %vm100_vm3, nan, %v113_v38 }
  0xd8   :  { %v115_v43 = vsel %vm99_vm4, 0.0, %v114_v42 }
  0xd9   :  { %v128_v44 = vsel %vm127_vm5, %v64_v25, %v126_v41  ;;  %v116_v47 = vsel %vm102_vm8, inf, %v115_v43 }
  0xda   :  { %v131_v45 = vsel %vm129_vm6, %v123_v36, %v128_v44  ;;  %v74_v51 = vrot.slane %v116_v47, %v73_v46 }
  0xdb   :  { %v132_v48 = vsel %vm118_vm7, nan, %v131_v45 }
  0xdc   :  { %v133_v49 = vsel %vm117_vm9, 0.0, %v132_v48 }
  0xdd   :  { %v134_v50 = vsel %vm120_vm10, inf, %v133_v49 }
  0xde   :  { %v78_v52 = vrot.slane %v134_v50, %v73_v46 }
  0xe0   :  { %v80_v53 = vsel %vm79_vm11, %v78_v52, %v74_v51 }
  0xe1   :  { %83 = vst.msk [vmem:[#allocation6] sm:$0x3] %vm82_vm12, %v80_v53 }
  0xe2   :  { %181 = shalt.err (!%p178_p12)
}
  0xe3   :  { %s182_s24 = scalar_lea.hbm %s236_s1, 32 }
  0xe4   :  { %p183_p13 = scmp.ne.s32.totalorder %s236_s1, %s182_s24  ;;  %p186_p0 = scmp.lt.u32.totalorder %s182_s24, %s236_s1 }
  0xe6   :  { %p188_p1 = pnand %p186_p0, %p183_p13 }
  0xe8   :  { %191 = shalt.err (!%p188_p1)
}
  0xe9   :  { %93 = dma.vmem_to_hbm [thread:$0]  %s91_s20, 32, %s236_s1, [#allocation5]  }
  0xea   :  { %194 = dma.done.wait [#allocation5], 32  }
  0xeb   :  { %195 = vsyncadd [#allocation5], 4294967264 }
  0xec   :  { %97 = vsyncpa [#allocation4], 1 }
  0xed   :  { %98 = vsyncpa [#allocation5], 1 }

</bundles_post_ra>
